<compile_context>
chip_gen: v7x
topology: tpu7x:2x2x1
jax: 0.10.0
libtpu: 0.0.40
codegen_flags: <defaults>
</compile_context>

<pallas_src>
import functools

import jax
import jax.numpy as jnp
from jax.experimental import pallas as pl
from jax.experimental.pallas import tpu as pltpu


def _round_up(n, m):
    return ((n + m - 1) // m) * m


def _detect_device_kind():
    try:
        return jax.devices()[0].device_kind.lower()
    except Exception:
        return ""


def _detect_lane_multiple():
    kind = _detect_device_kind()
    for tag in ("v2", "v3", "v4", "v5"):
        if tag in kind:
            return 128            # 128-wide MXU generations
    return 256                    # v6e / v7x: 2x 256x256 MXU


def _detect_vmem_capacity_bytes():
    try:
        cap = getattr(pltpu.get_tpu_info(), "vmem_capacity_bytes", None)
        if cap:
            return int(cap)
    except Exception:
        pass
    kind = _detect_device_kind()
    if any(tag in kind for tag in ("v4", "v5", "v6")):
        return 128 * 1024 * 1024
    return 64 * 1024 * 1024       # v7x (per TC) / unknown: be conservative


def _supports_buffered_pipeline_mode():
    try:
        pl.BlockSpec((8, 128), lambda i: (0, 0), pipeline_mode=pl.Buffered(1))
        return True
    except Exception:
        return False


_LANE = _detect_lane_multiple()
_VMEM_CAP = _detect_vmem_capacity_bytes()
_HAS_BUFFERED = _supports_buffered_pipeline_mode()


# ----------------------------------------------------------------------------
# Fused kernel: all layers on one resident-weight batch tile.
# ----------------------------------------------------------------------------
def _mlp_fused_kernel(num_layers, x_ref, *refs):
    """(Linear -> ReLU)*(L-1) -> Linear on one batch tile.

    refs = (w0, b0, ..., w_{L-1}, b_{L-1}, out_ref).  x arrives f32 and is cast
    to bf16 in-kernel; dots accumulate in f32; bias add / ReLU run in f32;
    cast back to bf16 only right before the next dot.
    """
    out_ref = refs[-1]
    param_refs = refs[:-1]

    h = x_ref[...].astype(jnp.bfloat16)              # f32 -> bf16 (VPU filler)
    for layer in range(num_layers):
        w_ref = param_refs[2 * layer]                # bf16 [in_pad, out_pad]
        b_ref = param_refs[2 * layer + 1]            # f32  [1, out_pad]
        acc = jnp.dot(h, w_ref[...], preferred_element_type=jnp.float32)
        acc = acc + b_ref[...]
        if layer < num_layers - 1:
            h = jnp.maximum(acc, 0.0).astype(jnp.bfloat16)
        else:
            out_ref[...] = acc.astype(out_ref.dtype)


# ----------------------------------------------------------------------------
# Fallback kernel: one Linear (+ optional ReLU) tiled over (M, N, K).
# ----------------------------------------------------------------------------
def _layer_kernel(apply_relu, x_ref, w_ref, b_ref, o_ref, acc_ref):
    k = pl.program_id(2)

    @pl.when(k == 0)
    def _():
        acc_ref[...] = jnp.zeros_like(acc_ref)

    acc_ref[...] += jnp.dot(x_ref[...], w_ref[...],
                            preferred_element_type=jnp.float32)

    @pl.when(k == pl.num_programs(2) - 1)
    def _():
        acc = acc_ref[...] + b_ref[...]
        if apply_relu:
            acc = jnp.maximum(acc, 0.0)
        o_ref[...] = acc.astype(o_ref.dtype)


def _pick_tile(total, lane, target):
    """Largest multiple of `lane` that divides `total` and is <= max(target, lane)."""
    best = lane
    limit = min(total, max(target, lane))
    d = lane
    while d <= limit:
        if total % d == 0:
            best = d
        d += lane
    return best


def _layerwise_forward(x_p, flat_params, tb):
    """Fallback when resident weights exceed the VMEM budget."""
    num_layers = len(flat_params) // 2
    m_pad = x_p.shape[0]
    h = x_p.astype(jnp.bfloat16)
    for layer in range(num_layers):
        w = flat_params[2 * layer]
        b = flat_params[2 * layer + 1]
        k_dim, n_dim = w.shape
        tm = tb
        tn = _pick_tile(n_dim, _LANE, 512)
        tk = _pick_tile(k_dim, _LANE, 1024)
        last = layer == num_layers - 1
        out_dtype = jnp.float32 if last else jnp.bfloat16

        need = (2 * (tm * tk * 2 + tk * tn * 2 + tn * 4 + tm * tn * 4)
                + tm * tn * 4 + (4 << 20))
        vmem_limit = int(min(max(need, 32 << 20), 0.92 * _VMEM_CAP))

        h = pl.pallas_call(
            functools.partial(_layer_kernel, not last),
            grid=(m_pad // tm, n_dim // tn, k_dim // tk),
            in_specs=[pl.BlockSpec((tm, tk), lambda i, j, k: (i, k)),
                      pl.BlockSpec((tk, tn), lambda i, j, k: (k, j)),
                      pl.BlockSpec((1, tn), lambda i, j, k: (0, j))],
            out_specs=pl.BlockSpec((tm, tn), lambda i, j, k: (i, j)),
            out_shape=jax.ShapeDtypeStruct((m_pad, n_dim), out_dtype),
            scratch_shapes=[pltpu.VMEM((tm, tn), jnp.float32)],
            compiler_params=pltpu.CompilerParams(
                dimension_semantics=("parallel", "parallel", "arbitrary"),
                vmem_limit_bytes=vmem_limit),
        )(h, w, b)
    return h


# ----------------------------------------------------------------------------
# Wrapper.
# ----------------------------------------------------------------------------
def mlp_v2_forward(x, params, *, tile_batch=512, force_layerwise=False,
                   single_buffer_weights=None):
    """x: [batch, data_dim].  params: list of (W [in, out] f32, b [1, out] f32)."""
    if single_buffer_weights is None:
        single_buffer_weights = _HAS_BUFFERED

    x = x.astype(jnp.float32)
    batch, data_dim = x.shape
    num_layers = len(params)
    num_classes = params[-1][0].shape[1]

    # Lane-dense padded feature dims for every layer boundary (128 or 256).
    dims = [data_dim] + [w.shape[1] for w, _ in params]
    pdims = [_round_up(d, _LANE) for d in dims]

    # Padded params: weights -> bf16 MXU operands, biases stay f32.
    flat_params = []
    for li, (w, b) in enumerate(params):
        in_p, out_p = pdims[li], pdims[li + 1]
        w_p = jnp.pad(w.astype(jnp.bfloat16),
                      ((0, in_p - w.shape[0]), (0, out_p - w.shape[1])))
        b_p = jnp.pad(b.astype(jnp.float32), ((0, 0), (0, out_p - b.shape[1])))
        flat_params += [w_p, b_p]
    weight_bytes = sum(int(p.size) * p.dtype.itemsize for p in flat_params)

    # ---- batch tiling -------------------------------------------------------
    batch16 = _round_up(batch, 16)                 # bf16 sublane packing
    tb = min(int(tile_batch), batch16)
    if batch16 >= 32:                              # >=2 grid steps -> both TCs on v7x
        tb = min(tb, _round_up((batch16 + 1) // 2, 16))

    # ---- VMEM budgeting -----------------------------------------------------
    budget = int(0.80 * _VMEM_CAP)
    weight_factor = 1 if single_buffer_weights else 2
    resident = weight_factor * weight_bytes
    # per-row tile bytes: double-buffered f32 x/out tiles + ~2 live f32 intermediates
    row_bytes = 2 * pdims[0] * 4 + 2 * pdims[-1] * 4 + 8 * max(pdims)
    use_fused = (not force_layerwise) and (resident + 16 * row_bytes <= budget)
    if use_fused:
        tb_cap = (budget - resident) // row_bytes
        tb = min(tb, max(16, (tb_cap // 16) * 16))
    tb = max(16, (tb // 16) * 16)
    padded_batch = _round_up(batch, tb)

    # Pad x only when needed (skip the extra HBM pass for aligned shapes);
    # the f32 -> bf16 cast happens inside the kernel.
    if padded_batch != batch or pdims[0] != data_dim:
        x_p = jnp.pad(x, ((0, padded_batch - batch), (0, pdims[0] - data_dim)))
    else:
        x_p = x

    if not use_fused:
        out_p = _layerwise_forward(x_p, flat_params, tb)
    else:
        kernel = functools.partial(_mlp_fused_kernel, num_layers)
        grid = (padded_batch // tb,)

        def _param_spec(shape):
            if single_buffer_weights:
                return pl.BlockSpec(shape, lambda i: (0, 0),
                                    pipeline_mode=pl.Buffered(1))
            return pl.BlockSpec(shape, lambda i: (0, 0))

        # x / out move per batch tile; weights & biases are VMEM-resident.
        in_specs = [pl.BlockSpec((tb, pdims[0]), lambda i: (i, 0))]
        for p in flat_params:
            in_specs.append(_param_spec(p.shape))
        out_specs = pl.BlockSpec((tb, pdims[-1]), lambda i: (i, 0))

        needed = (2 * weight_bytes                           # worst-case param buffers
                  + 2 * tb * (pdims[0] * 4 + pdims[-1] * 4)  # double-buffered x/out tiles
                  + 2 * tb * max(pdims) * 4                  # live f32 intermediates
                  + (4 << 20))                               # compiler scratch margin
        vmem_limit = int(min(max(needed, 32 << 20), 0.92 * _VMEM_CAP))

        flops = 2 * padded_batch * sum(pdims[i] * pdims[i + 1]
                                       for i in range(num_layers))
        bytes_accessed = (int(x_p.size) * 4 + weight_bytes
                          + padded_batch * pdims[-1] * 4)

        out_p = pl.pallas_call(
            kernel,
            grid=grid,
            in_specs=in_specs,
            out_specs=out_specs,
            out_shape=jax.ShapeDtypeStruct((padded_batch, pdims[-1]), jnp.float32),
            compiler_params=pltpu.CompilerParams(
                dimension_semantics=("parallel",),
                vmem_limit_bytes=vmem_limit),
            cost_estimate=pl.CostEstimate(
                flops=flops, transcendentals=0, bytes_accessed=bytes_accessed),
        )(x_p, *flat_params)

    out = out_p
    if padded_batch != batch or pdims[-1] != num_classes:
        out = out[:batch, :num_classes]
    return out


# ----------------------------------------------------------------------------
# Params / reference (PyTorch-equivalent semantics).
# ----------------------------------------------------------------------------
def init_params(key, data_dim, num_hiddens, num_classes):
    """PyTorch-style init: U(-1/sqrt(fan_in), 1/sqrt(fan_in)). W is [in, out]."""
    dims = [data_dim] + list(num_hiddens) + [num_classes]
    params = []
    for i in range(len(dims) - 1):
        fan_in, fan_out = dims[i], dims[i + 1]
        key, kw, kb = jax.random.split(key, 3)
        bound = 1.0 / jnp.sqrt(fan_in)
        w = jax.random.uniform(kw, (fan_in, fan_out), jnp.float32, -bound, bound)
        b = jax.random.uniform(kb, (1, fan_out), jnp.float32, -bound, bound)
        params.append((w, b))
    return params


def reference_forward_bf16(x, params):
    """Same bf16-input / f32-accumulate math as the kernels, in plain JAX."""
    h = x.astype(jnp.bfloat16)
    for i, (w, b) in enumerate(params):
        acc = jnp.dot(h, w.astype(jnp.bfloat16),
                      preferred_element_type=jnp.float32) + b
        if i < len(params) - 1:
            acc = jnp.maximum(acc, 0.0)
            h = acc.astype(jnp.bfloat16)
        else:
            h = acc
    return h


if __name__ == "__main__":
    key = jax.random.PRNGKey(0)
    k_x, k_p = jax.random.split(key)

    batch = 8
    data_dim = 16
    num_hiddens = [32, 64]
    num_classes = 8

    x = jax.random.normal(k_x, (batch, data_dim), jnp.float32)
    params = init_params(k_p, data_dim, num_hiddens, num_classes)

    ref = reference_forward_bf16(x, params)

    # Fused resident-weight path (single-buffered weights when supported);
    # retry with default double-buffering if that configuration fails to compile.
    try:
        out = jax.block_until_ready(jax.jit(mlp_v2_forward)(x, params))
    except Exception:
        out = jax.block_until_ready(
            jax.jit(functools.partial(mlp_v2_forward,
                                      single_buffer_weights=False))(x, params))
    assert out.shape == (batch, num_classes), out.shape
    assert jnp.allclose(out, ref, atol=1e-4, rtol=1e-4), "fused mismatch vs reference"

    # Layer-wise fallback path (used when resident weights exceed the VMEM budget).
    out_lw = jax.block_until_ready(
        jax.jit(functools.partial(mlp_v2_forward, force_layerwise=True))(x, params))
    assert out_lw.shape == (batch, num_classes), out_lw.shape
    assert jnp.allclose(out_lw, ref, atol=1e-4, rtol=1e-4), "layerwise mismatch vs reference"

    print("KERNEL_OK")
</pallas_src>

<mosaic_0001>
module attributes {stable_mosaic.version = 11 : i64} {
  func.func @_mlp_fused_kernel(%arg0: i32, %arg1: memref<16x256xf32, #tpu.memory_space<vmem>>, %arg2: memref<256x256xbf16, #tpu.memory_space<vmem>>, %arg3: memref<1x256xf32, #tpu.memory_space<vmem>>, %arg4: memref<256x256xbf16, #tpu.memory_space<vmem>>, %arg5: memref<1x256xf32, #tpu.memory_space<vmem>>, %arg6: memref<256x256xbf16, #tpu.memory_space<vmem>>, %arg7: memref<1x256xf32, #tpu.memory_space<vmem>>, %arg8: memref<16x256xf32, #tpu.memory_space<vmem>>) attributes {dimension_semantics = [#tpu.dimension_semantics<parallel>], iteration_bounds = array<i64: 1>, scalar_prefetch = 0 : i64, scratch_operands = 0 : i64, tpu.core_type = #tpu.core_type<tc>, window_params = [{transform_indices = @transform_0, window_bounds = array<i64: 16, 256>}, {pipeline_mode = #tpu.pipeline_mode<synchronous>, transform_indices = @transform_1, window_bounds = array<i64: 256, 256>}, {pipeline_mode = #tpu.pipeline_mode<synchronous>, transform_indices = @transform_2, window_bounds = array<i64: 1, 256>}, {pipeline_mode = #tpu.pipeline_mode<synchronous>, transform_indices = @transform_3, window_bounds = array<i64: 256, 256>}, {pipeline_mode = #tpu.pipeline_mode<synchronous>, transform_indices = @transform_4, window_bounds = array<i64: 1, 256>}, {pipeline_mode = #tpu.pipeline_mode<synchronous>, transform_indices = @transform_5, window_bounds = array<i64: 256, 256>}, {pipeline_mode = #tpu.pipeline_mode<synchronous>, transform_indices = @transform_6, window_bounds = array<i64: 1, 256>}, {transform_indices = @transform_7, window_bounds = array<i64: 16, 256>}]} {
    %c0 = arith.constant 0 : index
    %c0_0 = arith.constant 0 : index
    %0 = vector.load %arg1[%c0, %c0_0] : memref<16x256xf32, #tpu.memory_space<vmem>>, vector<16x256xf32>
    %1 = arith.truncf %0 : vector<16x256xf32> to vector<16x256xbf16>
    %c0_1 = arith.constant 0 : index
    %c0_2 = arith.constant 0 : index
    %2 = vector.load %arg2[%c0_1, %c0_2] : memref<256x256xbf16, #tpu.memory_space<vmem>>, vector<256x256xbf16>
    %cst = arith.constant dense<0.000000e+00> : vector<16x256xf32>
    %3 = tpu.matmul %1, %2, %cst {dimension_numbers = #tpu.dot_dimension_numbers<[1], [0], [0], [1], [0, 0, 1, 1], [], []>} : vector<16x256xbf16>, vector<256x256xbf16>, vector<16x256xf32> -> vector<16x256xf32>
    %c0_3 = arith.constant 0 : index
    %c0_4 = arith.constant 0 : index
    %4 = vector.load %arg3[%c0_3, %c0_4] : memref<1x256xf32, #tpu.memory_space<vmem>>, vector<1x256xf32>
    %5 = vector.broadcast %4 : vector<1x256xf32> to vector<16x256xf32>
    %6 = arith.addf %3, %5 : vector<16x256xf32>
    %cst_5 = arith.constant 0.000000e+00 : f32
    %7 = vector.broadcast %cst_5 : f32 to vector<16x256xf32>
    %8 = arith.maximumf %6, %7 : vector<16x256xf32>
    %9 = arith.truncf %8 : vector<16x256xf32> to vector<16x256xbf16>
    %c0_6 = arith.constant 0 : index
    %c0_7 = arith.constant 0 : index
    %10 = vector.load %arg4[%c0_6, %c0_7] : memref<256x256xbf16, #tpu.memory_space<vmem>>, vector<256x256xbf16>
    %cst_8 = arith.constant dense<0.000000e+00> : vector<16x256xf32>
    %11 = tpu.matmul %9, %10, %cst_8 {dimension_numbers = #tpu.dot_dimension_numbers<[1], [0], [0], [1], [0, 0, 1, 1], [], []>} : vector<16x256xbf16>, vector<256x256xbf16>, vector<16x256xf32> -> vector<16x256xf32>
    %c0_9 = arith.constant 0 : index
    %c0_10 = arith.constant 0 : index
    %12 = vector.load %arg5[%c0_9, %c0_10] : memref<1x256xf32, #tpu.memory_space<vmem>>, vector<1x256xf32>
    %13 = vector.broadcast %12 : vector<1x256xf32> to vector<16x256xf32>
    %14 = arith.addf %11, %13 : vector<16x256xf32>
    %cst_11 = arith.constant 0.000000e+00 : f32
    %15 = vector.broadcast %cst_11 : f32 to vector<16x256xf32>
    %16 = arith.maximumf %14, %15 : vector<16x256xf32>
    %17 = arith.truncf %16 : vector<16x256xf32> to vector<16x256xbf16>
    %c0_12 = arith.constant 0 : index
    %c0_13 = arith.constant 0 : index
    %18 = vector.load %arg6[%c0_12, %c0_13] : memref<256x256xbf16, #tpu.memory_space<vmem>>, vector<256x256xbf16>
    %cst_14 = arith.constant dense<0.000000e+00> : vector<16x256xf32>
    %19 = tpu.matmul %17, %18, %cst_14 {dimension_numbers = #tpu.dot_dimension_numbers<[1], [0], [0], [1], [0, 0, 1, 1], [], []>} : vector<16x256xbf16>, vector<256x256xbf16>, vector<16x256xf32> -> vector<16x256xf32>
    %c0_15 = arith.constant 0 : index
    %c0_16 = arith.constant 0 : index
    %20 = vector.load %arg7[%c0_15, %c0_16] : memref<1x256xf32, #tpu.memory_space<vmem>>, vector<1x256xf32>
    %21 = vector.broadcast %20 : vector<1x256xf32> to vector<16x256xf32>
    %22 = arith.addf %19, %21 : vector<16x256xf32>
    %c0_17 = arith.constant 0 : index
    %c0_18 = arith.constant 0 : index
    %23 = vector.load %arg8[%c0_17, %c0_18] : memref<16x256xf32, #tpu.memory_space<vmem>>, vector<16x256xf32>
    tpu.vector_store %arg8[%c0_17, %c0_18], %22 {strides = array<i32>} : memref<16x256xf32, #tpu.memory_space<vmem>>, vector<16x256xf32>,
    return
  }
  func.func @transform_0(%arg0: i32) -> (i32, i32) {
    %c0_i32 = arith.constant 0 : i32
    %c0_i32_0 = arith.constant 0 : i32
    return %arg0, %c0_i32 : i32, i32
  }
  func.func @transform_1(%arg0: i32) -> (i32, i32) {
    %c0_i32 = arith.constant 0 : i32
    %c0_i32_0 = arith.constant 0 : i32
    %c0_i32_1 = arith.constant 0 : i32
    return %c0_i32, %c0_i32_0 : i32, i32
  }
  func.func @transform_2(%arg0: i32) -> (i32, i32) {
    %c0_i32 = arith.constant 0 : i32
    %c0_i32_0 = arith.constant 0 : i32
    %c0_i32_1 = arith.constant 0 : i32
    return %c0_i32, %c0_i32_0 : i32, i32
  }
  func.func @transform_3(%arg0: i32) -> (i32, i32) {
    %c0_i32 = arith.constant 0 : i32
    %c0_i32_0 = arith.constant 0 : i32
    %c0_i32_1 = arith.constant 0 : i32
    return %c0_i32, %c0_i32_0 : i32, i32
  }
  func.func @transform_4(%arg0: i32) -> (i32, i32) {
    %c0_i32 = arith.constant 0 : i32
    %c0_i32_0 = arith.constant 0 : i32
    %c0_i32_1 = arith.constant 0 : i32
    return %c0_i32, %c0_i32_0 : i32, i32
  }
  func.func @transform_5(%arg0: i32) -> (i32, i32) {
    %c0_i32 = arith.constant 0 : i32
    %c0_i32_0 = arith.constant 0 : i32
    %c0_i32_1 = arith.constant 0 : i32
    return %c0_i32, %c0_i32_0 : i32, i32
  }
  func.func @transform_6(%arg0: i32) -> (i32, i32) {
    %c0_i32 = arith.constant 0 : i32
    %c0_i32_0 = arith.constant 0 : i32
    %c0_i32_1 = arith.constant 0 : i32
    return %c0_i32, %c0_i32_0 : i32, i32
  }
  func.func @transform_7(%arg0: i32) -> (i32, i32) {
    %c0_i32 = arith.constant 0 : i32
    %c0_i32_0 = arith.constant 0 : i32
    return %arg0, %c0_i32 : i32, i32
  }
}

module attributes {stable_mosaic.version = 11 : i64} {
  func.func @_mlp_fused_kernel(%arg0: i32, %arg1: memref<16x256xf32, #tpu.memory_space<vmem>>, %arg2: memref<256x256xbf16, #tpu.memory_space<vmem>>, %arg3: memref<1x256xf32, #tpu.memory_space<vmem>>, %arg4: memref<256x256xbf16, #tpu.memory_space<vmem>>, %arg5: memref<1x256xf32, #tpu.memory_space<vmem>>, %arg6: memref<256x256xbf16, #tpu.memory_space<vmem>>, %arg7: memref<1x256xf32, #tpu.memory_space<vmem>>, %arg8: memref<16x256xf32, #tpu.memory_space<vmem>>) attributes {dimension_semantics = [#tpu.dimension_semantics<parallel>], iteration_bounds = array<i64: 1>, scalar_prefetch = 0 : i64, scratch_operands = 0 : i64, tpu.core_type = #tpu.core_type<tc>, window_params = [{transform_indices = @transform_0, window_bounds = array<i64: 16, 256>}, {pipeline_mode = #tpu.pipeline_mode<synchronous>, transform_indices = @transform_1, window_bounds = array<i64: 256, 256>}, {pipeline_mode = #tpu.pipeline_mode<synchronous>, transform_indices = @transform_2, window_bounds = array<i64: 1, 256>}, {pipeline_mode = #tpu.pipeline_mode<synchronous>, transform_indices = @transform_3, window_bounds = array<i64: 256, 256>}, {pipeline_mode = #tpu.pipeline_mode<synchronous>, transform_indices = @transform_4, window_bounds = array<i64: 1, 256>}, {pipeline_mode = #tpu.pipeline_mode<synchronous>, transform_indices = @transform_5, window_bounds = array<i64: 256, 256>}, {pipeline_mode = #tpu.pipeline_mode<synchronous>, transform_indices = @transform_6, window_bounds = array<i64: 1, 256>}, {transform_indices = @transform_7, window_bounds = array<i64: 16, 256>}]} {
    %c0 = arith.constant 0 : index
    %c0_0 = arith.constant 0 : index
    %0 = vector.load %arg1[%c0, %c0_0] : memref<16x256xf32, #tpu.memory_space<vmem>>, vector<16x256xf32>
    %1 = arith.truncf %0 : vector<16x256xf32> to vector<16x256xbf16>
    %c0_1 = arith.constant 0 : index
    %c0_2 = arith.constant 0 : index
    %2 = vector.load %arg2[%c0_1, %c0_2] : memref<256x256xbf16, #tpu.memory_space<vmem>>, vector<256x256xbf16>
    %cst = arith.constant dense<0.000000e+00> : vector<16x256xf32>
    %3 = tpu.matmul %1, %2, %cst {dimension_numbers = #tpu.dot_dimension_numbers<[1], [0], [0], [1], [0, 0, 1, 1], [], []>} : vector<16x256xbf16>, vector<256x256xbf16>, vector<16x256xf32> -> vector<16x256xf32>
    %c0_3 = arith.constant 0 : index
    %c0_4 = arith.constant 0 : index
    %4 = vector.load %arg3[%c0_3, %c0_4] : memref<1x256xf32, #tpu.memory_space<vmem>>, vector<1x256xf32>
    %5 = vector.broadcast %4 : vector<1x256xf32> to vector<16x256xf32>
    %6 = arith.addf %3, %5 : vector<16x256xf32>
    %cst_5 = arith.constant 0.000000e+00 : f32
    %7 = vector.broadcast %cst_5 : f32 to vector<16x256xf32>
    %8 = arith.maximumf %6, %7 : vector<16x256xf32>
    %9 = arith.truncf %8 : vector<16x256xf32> to vector<16x256xbf16>
    %c0_6 = arith.constant 0 : index
    %c0_7 = arith.constant 0 : index
    %10 = vector.load %arg4[%c0_6, %c0_7] : memref<256x256xbf16, #tpu.memory_space<vmem>>, vector<256x256xbf16>
    %cst_8 = arith.constant dense<0.000000e+00> : vector<16x256xf32>
    %11 = tpu.matmul %9, %10, %cst_8 {dimension_numbers = #tpu.dot_dimension_numbers<[1], [0], [0], [1], [0, 0, 1, 1], [], []>} : vector<16x256xbf16>, vector<256x256xbf16>, vector<16x256xf32> -> vector<16x256xf32>
    %c0_9 = arith.constant 0 : index
    %c0_10 = arith.constant 0 : index
    %12 = vector.load %arg5[%c0_9, %c0_10] : memref<1x256xf32, #tpu.memory_space<vmem>>, vector<1x256xf32>
    %13 = vector.broadcast %12 : vector<1x256xf32> to vector<16x256xf32>
    %14 = arith.addf %11, %13 : vector<16x256xf32>
    %cst_11 = arith.constant 0.000000e+00 : f32
    %15 = vector.broadcast %cst_11 : f32 to vector<16x256xf32>
    %16 = arith.maximumf %14, %15 : vector<16x256xf32>
    %17 = arith.truncf %16 : vector<16x256xf32> to vector<16x256xbf16>
    %c0_12 = arith.constant 0 : index
    %c0_13 = arith.constant 0 : index
    %18 = vector.load %arg6[%c0_12, %c0_13] : memref<256x256xbf16, #tpu.memory_space<vmem>>, vector<256x256xbf16>
    %cst_14 = arith.constant dense<0.000000e+00> : vector<16x256xf32>
    %19 = tpu.matmul %17, %18, %cst_14 {dimension_numbers = #tpu.dot_dimension_numbers<[1], [0], [0], [1], [0, 0, 1, 1], [], []>} : vector<16x256xbf16>, vector<256x256xbf16>, vector<16x256xf32> -> vector<16x256xf32>
    %c0_15 = arith.constant 0 : index
    %c0_16 = arith.constant 0 : index
    %20 = vector.load %arg7[%c0_15, %c0_16] : memref<1x256xf32, #tpu.memory_space<vmem>>, vector<1x256xf32>
    %21 = vector.broadcast %20 : vector<1x256xf32> to vector<16x256xf32>
    %22 = arith.addf %19, %21 : vector<16x256xf32>
    %c0_17 = arith.constant 0 : index
    %c0_18 = arith.constant 0 : index
    %23 = vector.load %arg8[%c0_17, %c0_18] : memref<16x256xf32, #tpu.memory_space<vmem>>, vector<16x256xf32>
    tpu.vector_store %arg8[%c0_17, %c0_18], %22 {strides = array<i32>} : memref<16x256xf32, #tpu.memory_space<vmem>>, vector<16x256xf32>,
    return
  }
  func.func @transform_0(%arg0: i32) -> (i32, i32) {
    %c0_i32 = arith.constant 0 : i32
    %c0_i32_0 = arith.constant 0 : i32
    return %arg0, %c0_i32 : i32, i32
  }
  func.func @transform_1(%arg0: i32) -> (i32, i32) {
    %c0_i32 = arith.constant 0 : i32
    %c0_i32_0 = arith.constant 0 : i32
    %c0_i32_1 = arith.constant 0 : i32
    return %c0_i32, %c0_i32_0 : i32, i32
  }
  func.func @transform_2(%arg0: i32) -> (i32, i32) {
    %c0_i32 = arith.constant 0 : i32
    %c0_i32_0 = arith.constant 0 : i32
    %c0_i32_1 = arith.constant 0 : i32
    return %c0_i32, %c0_i32_0 : i32, i32
  }
  func.func @transform_3(%arg0: i32) -> (i32, i32) {
    %c0_i32 = arith.constant 0 : i32
    %c0_i32_0 = arith.constant 0 : i32
    %c0_i32_1 = arith.constant 0 : i32
    return %c0_i32, %c0_i32_0 : i32, i32
  }
  func.func @transform_4(%arg0: i32) -> (i32, i32) {
    %c0_i32 = arith.constant 0 : i32
    %c0_i32_0 = arith.constant 0 : i32
    %c0_i32_1 = arith.constant 0 : i32
    return %c0_i32, %c0_i32_0 : i32, i32
  }
  func.func @transform_5(%arg0: i32) -> (i32, i32) {
    %c0_i32 = arith.constant 0 : i32
    %c0_i32_0 = arith.constant 0 : i32
    %c0_i32_1 = arith.constant 0 : i32
    return %c0_i32, %c0_i32_0 : i32, i32
  }
  func.func @transform_6(%arg0: i32) -> (i32, i32) {
    %c0_i32 = arith.constant 0 : i32
    %c0_i32_0 = arith.constant 0 : i32
    %c0_i32_1 = arith.constant 0 : i32
    return %c0_i32, %c0_i32_0 : i32, i32
  }
  func.func @transform_7(%arg0: i32) -> (i32, i32) {
    %c0_i32 = arith.constant 0 : i32
    %c0_i32_0 = arith.constant 0 : i32
    return %arg0, %c0_i32 : i32, i32
  }
}

</mosaic_0001>

<bundles_post_ra>
// kernel: mlp_v2_forward.1
= control target key start
LH: loop header
LB: loop body
LE: loop exit
PB: predicated region body
PF: predicated region fallthrough
CT: control target
= control target key end

     0   :  { %s1394_s1 = inlined_call_operand.vmem [shape: bf16[256,256], index: 1, kind: input, shape index: {}]   ;;  %s1395_s0 = inlined_call_operand.vmem [shape: f32[16,256], index: 0, kind: input, shape index: {}]   ;;  %s1396_s3 = inlined_call_operand.vmem [shape: bf16[256,256], index: 3, kind: input, shape index: {}]   ;;  %s1397_s5 = inlined_call_operand.vmem [shape: bf16[256,256], index: 5, kind: input, shape index: {}]   ;;  %s1398_s2 = inlined_call_operand.vmem [shape: f32[1,256], index: 2, kind: input, shape index: {}]   ;;  %s1399_s4 = inlined_call_operand.vmem [shape: f32[1,256], index: 4, kind: input, shape index: {}]   ;;  %s1400_s6 = inlined_call_operand.vmem [shape: f32[1,256], index: 6, kind: input, shape index: {}]   ;;  %s1401_s7 = inlined_call_operand.vmem [shape: f32[16,256], index: 7, kind: output, shape index: {}]  }
   0x1   :  { %v889_v0 = vld [vmem:[%s1394_s1 + $0x4] ss:$8 sps:$4 sm:$0xff]   ;;  %v891_v1 = vld [vmem:[%s1394_s1] ss:$8 sps:$4 sm:$0xff]   ;;  %v892_v2 = vld [vmem:[%s1394_s1 + $0x14] ss:$8 sps:$4 sm:$0xff]  }
   0x2   :  { %236 = vmatprep.subr.bf16.mxu0 %v889_v0  ;;  %v894_v3 = vld [vmem:[%s1394_s1 + $0x10] ss:$8 sps:$4 sm:$0xff]   ;;  %v895_v4 = vld [vmem:[%s1394_s1 + $0x24] ss:$8 sps:$4 sm:$0xff]   ;;  %v897_v5 = vld [vmem:[%s1394_s1 + $0x20] ss:$8 sps:$4 sm:$0xff]  }
   0x3   :  { %237 = vmatpush1.bf16.msra.mxu0 %v891_v1  ;;  %v898_v6 = vld [vmem:[%s1394_s1 + $0x34] ss:$8 sps:$4 sm:$0xff]   ;;  %v900_v7 = vld [vmem:[%s1394_s1 + $0x30] ss:$8 sps:$4 sm:$0xff]   ;;  %v901_v8 = vld [vmem:[%s1394_s1 + $0x44] ss:$8 sps:$4 sm:$0xff]  }
   0x4   :  { %238 = vmatprep.subr.bf16.mxu0 %v892_v2  ;;  %v903_v9 = vld [vmem:[%s1394_s1 + $0x40] ss:$8 sps:$4 sm:$0xff]   ;;  %v904_v10 = vld [vmem:[%s1394_s1 + $0x54] ss:$8 sps:$4 sm:$0xff]   ;;  %v906_v11 = vld [vmem:[%s1394_s1 + $0x50] ss:$8 sps:$4 sm:$0xff]  }
   0x5   :  { %v907_v12 = vld [vmem:[%s1394_s1 + $0x64] ss:$8 sps:$4 sm:$0xff]   ;;  %v29_v14 = vld [vmem:[%s1395_s0 + $0x18] sm:$0xff]  ;;  %v909_v15 = vld [vmem:[%s1394_s1 + $0x60] ss:$8 sps:$4 sm:$0xff]  }
   0x6   :  { %v27_v13 = vld [vmem:[%s1395_s0 + $0x8] sm:$0xff]  ;;  %v910_v16 = vld [vmem:[%s1394_s1 + $0x74] ss:$8 sps:$4 sm:$0xff]   ;;  %v942_v21 = vld [vmem:[%s1396_s3 + $0x10] ss:$8 sps:$4 sm:$0xff]  }
   0x7   :  { %239 = vmatpush1.bf16.msra.mxu0 %v894_v3  ;;  %v31_v17 = vpack.c.bf16 %v29_v14, %v27_v13  ;;  %v937_v18 = vld [vmem:[%s1396_s3 + $0x4] ss:$8 sps:$4 sm:$0xff]   ;;  %v939_v19 = vld [vmem:[%s1396_s3] ss:$8 sps:$4 sm:$0xff]   ;;  %v940_v20 = vld [vmem:[%s1396_s3 + $0x14] ss:$8 sps:$4 sm:$0xff]  }
   0x8   :  { %240 = vmatprep.subr.bf16.mxu0 %v895_v4  ;;  %489 = vmatprep.subr.bf16.mxu1 %v937_v18  ;;  %v912_v22 = vld [vmem:[%s1394_s1 + $0x70] ss:$8 sps:$4 sm:$0xff]   ;;  %v943_v23 = vld [vmem:[%s1396_s3 + $0x24] ss:$8 sps:$4 sm:$0xff]   ;;  %v945_v25 = vld [vmem:[%s1396_s3 + $0x20] ss:$8 sps:$4 sm:$0xff]  }
   0x9   :  { %268 = vmatprep.mubr.bf16.mxu0 %v31_v17  ;;  %490 = vmatpush1.bf16.msra.mxu1 %v939_v19  ;;  %v913_v24 = vld [vmem:[%s1394_s1 + $0x84] ss:$8 sps:$4 sm:$0xff]   ;;  %v915_v26 = vld [vmem:[%s1394_s1 + $0x80] ss:$8 sps:$4 sm:$0xff]   ;;  %v946_v27 = vld [vmem:[%s1396_s3 + $0x34] ss:$8 sps:$4 sm:$0xff]  }
   0xa   :  { %491 = vmatprep.subr.bf16.mxu1 %v940_v20  ;;  %v916_v28 = vld [vmem:[%s1394_s1 + $0x94] ss:$8 sps:$4 sm:$0xff]   ;;  %v948_v29 = vld [vmem:[%s1396_s3 + $0x30] ss:$8 sps:$4 sm:$0xff]   ;;  %v949_v31 = vld [vmem:[%s1396_s3 + $0x44] ss:$8 sps:$4 sm:$0xff]  }
   0xb   :  { %241 = vmatpush1.bf16.msra.mxu0 %v897_v5  ;;  %v918_v30 = vld [vmem:[%s1394_s1 + $0x90] ss:$8 sps:$4 sm:$0xff]   ;;  %v919_v32 = vld [vmem:[%s1394_s1 + $0xa4] ss:$8 sps:$4 sm:$0xff]   ;;  %v951_v33 = vld [vmem:[%s1396_s3 + $0x40] ss:$8 sps:$4 sm:$0xff]  }
   0xc   :  { %242 = vmatprep.subr.bf16.mxu0 %v898_v6  ;;  %v921_v34 = vld [vmem:[%s1394_s1 + $0xa0] ss:$8 sps:$4 sm:$0xff]   ;;  %v952_v35 = vld [vmem:[%s1396_s3 + $0x54] ss:$8 sps:$4 sm:$0xff]   ;;  %v954_v37 = vld [vmem:[%s1396_s3 + $0x50] ss:$8 sps:$4 sm:$0xff]  }
   0xd   :  { %492 = vmatpush1.bf16.msra.mxu1 %v942_v21  ;;  %v922_v36 = vld [vmem:[%s1394_s1 + $0xb4] ss:$8 sps:$4 sm:$0xff]   ;;  %v924_v38 = vld [vmem:[%s1394_s1 + $0xb0] ss:$8 sps:$4 sm:$0xff]   ;;  %v955_v39 = vld [vmem:[%s1396_s3 + $0x64] ss:$8 sps:$4 sm:$0xff]  }
   0xe   :  { %493 = vmatprep.subr.bf16.mxu1 %v943_v23  ;;  %v925_v40 = vld [vmem:[%s1394_s1 + $0xc4] ss:$8 sps:$4 sm:$0xff]   ;;  %v957_v41 = vld [vmem:[%s1396_s3 + $0x60] ss:$8 sps:$4 sm:$0xff]   ;;  %v958_v43 = vld [vmem:[%s1396_s3 + $0x74] ss:$8 sps:$4 sm:$0xff]  }
   0xf   :  { %243 = vmatpush1.bf16.msra.mxu0 %v900_v7  ;;  %v927_v42 = vld [vmem:[%s1394_s1 + $0xc0] ss:$8 sps:$4 sm:$0xff]   ;;  %v928_v44 = vld [vmem:[%s1394_s1 + $0xd4] ss:$8 sps:$4 sm:$0xff]   ;;  %v960_v45 = vld [vmem:[%s1396_s3 + $0x70] ss:$8 sps:$4 sm:$0xff]  }
  0x10   :  { %244 = vmatprep.subr.bf16.mxu0 %v901_v8  ;;  %v930_v46 = vld [vmem:[%s1394_s1 + $0xd0] ss:$8 sps:$4 sm:$0xff]   ;;  %v961_v47 = vld [vmem:[%s1396_s3 + $0x84] ss:$8 sps:$4 sm:$0xff]   ;;  %v963_v49 = vld [vmem:[%s1396_s3 + $0x80] ss:$8 sps:$4 sm:$0xff]  }
  0x11   :  { %494 = vmatpush1.bf16.msra.mxu1 %v945_v25  ;;  %v931_v48 = vld [vmem:[%s1394_s1 + $0xe4] ss:$8 sps:$4 sm:$0xff]   ;;  %v933_v50 = vld [vmem:[%s1394_s1 + $0xe0] ss:$8 sps:$4 sm:$0xff]   ;;  %v964_v51 = vld [vmem:[%s1396_s3 + $0x94] ss:$8 sps:$4 sm:$0xff]  }
  0x12   :  { %495 = vmatprep.subr.bf16.mxu1 %v946_v27  ;;  %v934_v52 = vld [vmem:[%s1394_s1 + $0xf4] ss:$8 sps:$4 sm:$0xff]   ;;  %v936_v53 = vld [vmem:[%s1394_s1 + $0xf0] ss:$8 sps:$4 sm:$0xff]   ;;  %v26_v55 = vld [vmem:[%s1395_s0] sm:$0xff] }
  0x13   :  { %245 = vmatpush1.bf16.msra.mxu0 %v903_v9  ;;  %v966_v54 = vld [vmem:[%s1396_s3 + $0x90] ss:$8 sps:$4 sm:$0xff]   ;;  %v967_v57 = vld [vmem:[%s1396_s3 + $0xa4] ss:$8 sps:$4 sm:$0xff]   ;;  %v969_v59 = vld [vmem:[%s1396_s3 + $0xa0] ss:$8 sps:$4 sm:$0xff]  }
  0x14   :  { %246 = vmatprep.subr.bf16.mxu0 %v904_v10  ;;  %v28_v56 = vld [vmem:[%s1395_s0 + $0x10] sm:$0xff]  ;;  %v973_v62 = vld [vmem:[%s1396_s3 + $0xc4] ss:$8 sps:$4 sm:$0xff]   ;;  %v975_v63 = vld [vmem:[%s1396_s3 + $0xc0] ss:$8 sps:$4 sm:$0xff]  }
  0x15   :  { %496 = vmatpush1.bf16.msra.mxu1 %v948_v29  ;;  %v30_v58 = vpack.c.bf16 %v28_v56, %v26_v55  ;;  %v970_v60 = vld [vmem:[%s1396_s3 + $0xb4] ss:$8 sps:$4 sm:$0xff]   ;;  %v972_v61 = vld [vmem:[%s1396_s3 + $0xb0] ss:$8 sps:$4 sm:$0xff]   ;;  %v979_v2 = vld [vmem:[%s1396_s3 + $0xe4] ss:$8 sps:$4 sm:$0xff]  }
  0x16   :  { %497 = vmatprep.subr.bf16.mxu1 %v949_v31  ;;  %v976_v0 = vld [vmem:[%s1396_s3 + $0xd4] ss:$8 sps:$4 sm:$0xff]   ;;  %v978_v1 = vld [vmem:[%s1396_s3 + $0xd0] ss:$8 sps:$4 sm:$0xff]   ;;  %v981_v3 = vld [vmem:[%s1396_s3 + $0xe0] ss:$8 sps:$4 sm:$0xff]  }
  0x17   :  { %247 = vmatpush1.bf16.msra.mxu0 %v906_v11  ;;  %v982_v4 = vld [vmem:[%s1396_s3 + $0xf4] ss:$8 sps:$4 sm:$0xff]   ;;  %v984_v5 = vld [vmem:[%s1396_s3 + $0xf0] ss:$8 sps:$4 sm:$0xff]   ;;  %v985_v6 = vld [vmem:[%s1397_s5] ss:$8 sps:$4 sm:$0xff]  }
  0x18   :  { %248 = vmatprep.subr.bf16.mxu0 %v907_v12  ;;  %v987_v7 = vld [vmem:[%s1397_s5 + $0x4] ss:$8 sps:$4 sm:$0xff]   ;;  %v990_v8 = vld [vmem:[%s1397_s5 + $0x14] ss:$8 sps:$4 sm:$0xff]   ;;  %v988_v9 = vld [vmem:[%s1397_s5 + $0x10] ss:$8 sps:$4 sm:$0xff]  }
  0x19   :  { %498 = vmatpush1.bf16.msra.mxu1 %v951_v33  ;;  %v993_v10 = vld [vmem:[%s1397_s5 + $0x24] ss:$8 sps:$4 sm:$0xff]   ;;  %v991_v11 = vld [vmem:[%s1397_s5 + $0x20] ss:$8 sps:$4 sm:$0xff]   ;;  %v996_v12 = vld [vmem:[%s1397_s5 + $0x34] ss:$8 sps:$4 sm:$0xff]  }
  0x1a   :  { %499 = vmatprep.subr.bf16.mxu1 %v952_v35  ;;  %v994_v13 = vld [vmem:[%s1397_s5 + $0x30] ss:$8 sps:$4 sm:$0xff]   ;;  %v999_v14 = vld [vmem:[%s1397_s5 + $0x44] ss:$8 sps:$4 sm:$0xff]   ;;  %v1003_v19 = vld [vmem:[%s1397_s5 + $0x60] ss:$8 sps:$4 sm:$0xff]  }
  0x1b   :  { %249 = vmatpush1.bf16.msra.mxu0 %v909_v15  ;;  %v997_v15 = vld [vmem:[%s1397_s5 + $0x40] ss:$8 sps:$4 sm:$0xff]   ;;  %v1000_v17 = vld [vmem:[%s1397_s5 + $0x50] ss:$8 sps:$4 sm:$0xff]   ;;  %v1005_v18 = vld [vmem:[%s1397_s5 + $0x64] ss:$8 sps:$4 sm:$0xff]  }
  0x1c   :  { %250 = vmatprep.subr.bf16.mxu0 %v910_v16  ;;  %v1002_v16 = vld [vmem:[%s1397_s5 + $0x54] ss:$8 sps:$4 sm:$0xff]   ;;  %v1006_v21 = vld [vmem:[%s1397_s5 + $0x70] ss:$8 sps:$4 sm:$0xff]   ;;  %v1009_v23 = vld [vmem:[%s1397_s5 + $0x80] ss:$8 sps:$4 sm:$0xff]  }
  0x1d   :  { %500 = vmatpush1.bf16.msra.mxu1 %v954_v37  ;;  %v1008_v20 = vld [vmem:[%s1397_s5 + $0x74] ss:$8 sps:$4 sm:$0xff]   ;;  %v1012_v25 = vld [vmem:[%s1397_s5 + $0x90] ss:$8 sps:$4 sm:$0xff]   ;;  %v1015_v27 = vld [vmem:[%s1397_s5 + $0xa0] ss:$8 sps:$4 sm:$0xff]  }
  0x1e   :  { %501 = vmatprep.subr.bf16.mxu1 %v955_v39  ;;  %v1018_v29 = vld [vmem:[%s1397_s5 + $0xb0] ss:$8 sps:$4 sm:$0xff]   ;;  %v1021_v31 = vld [vmem:[%s1397_s5 + $0xc0] ss:$8 sps:$4 sm:$0xff]   ;;  %v1029_v55 = vld [vmem:[%s1397_s5 + $0xe4] ss:$8 sps:$4 sm:$0xff]  }
  0x1f   :  { %251 = vmatpush1.bf16.msra.mxu0 %v912_v22  ;;  %v1011_v22 = vld [vmem:[%s1397_s5 + $0x84] ss:$8 sps:$4 sm:$0xff]   ;;  %v1024_v33 = vld [vmem:[%s1397_s5 + $0xd0] ss:$8 sps:$4 sm:$0xff]   ;;  %v64_v37 = vld [vmem:[%s1398_s2] sm:$0x3] }
  0x20   :  { %252 = vmatprep.subr.bf16.mxu0 %v913_v24  ;;  %v1014_v24 = vld [vmem:[%s1397_s5 + $0x94] ss:$8 sps:$4 sm:$0xff]   ;;  %v1027_v56 = vld [vmem:[%s1397_s5 + $0xe0] ss:$8 sps:$4 sm:$0xff]  }
  0x21   :  { %502 = vmatpush1.bf16.msra.mxu1 %v957_v41 }
  0x22   :  { %503 = vmatprep.subr.bf16.mxu1 %v958_v43 }
  0x23   :  { %253 = vmatpush1.bf16.msra.mxu0 %v915_v26  ;;  %v1017_v26 = vld [vmem:[%s1397_s5 + $0xa4] ss:$8 sps:$4 sm:$0xff]  }
  0x24   :  { %254 = vmatprep.subr.bf16.mxu0 %v916_v28  ;;  %v1020_v28 = vld [vmem:[%s1397_s5 + $0xb4] ss:$8 sps:$4 sm:$0xff]  }
  0x25   :  { %504 = vmatpush1.bf16.msra.mxu1 %v960_v45 }
  0x26   :  { %505 = vmatprep.subr.bf16.mxu1 %v961_v47 }
  0x27   :  { %255 = vmatpush1.bf16.msra.mxu0 %v918_v30  ;;  %v1023_v30 = vld [vmem:[%s1397_s5 + $0xc4] ss:$8 sps:$4 sm:$0xff]  }
  0x28   :  { %256 = vmatprep.subr.bf16.mxu0 %v919_v32  ;;  %v1026_v32 = vld [vmem:[%s1397_s5 + $0xd4] ss:$8 sps:$4 sm:$0xff]  }
  0x29   :  { %506 = vmatpush1.bf16.msra.mxu1 %v963_v49 }
  0x2a   :  { %507 = vmatprep.subr.bf16.mxu1 %v964_v51 }
  0x2b   :  { %257 = vmatpush1.bf16.msra.mxu0 %v921_v34  ;;  %v66_v34 = vlaneseq }
  0x2c   :  { %258 = vmatprep.subr.bf16.mxu0 %v922_v36 }
  0x2d   :  { %508 = vmatpush1.bf16.msra.mxu1 %v966_v54  ;;  %v67_v35 = vshrl.u32 %v66_v34, 7 }
  0x2e   :  { %509 = vmatprep.subr.bf16.mxu1 %v967_v57  ;;  %v1032_v57 = vld [vmem:[%s1397_s5 + $0xf4] ss:$8 sps:$4 sm:$0xff]  }
  0x2f   :  { %259 = vmatpush1.bf16.msra.mxu0 %v924_v38  ;;  %v68_v36 = vsub.s32 0, %v67_v35  ;;  %v72_v38 = vsub.s32 1, %v67_v35 }
  0x30   :  { %260 = vmatprep.subr.bf16.mxu0 %v925_v40 }
  0x31   :  { %510 = vmatpush1.bf16.msra.mxu1 %v969_v59  ;;  %v69_v39 = vrot.slane %v64_v37, %v68_v36  ;;  %v73_v40 = vrot.slane %v64_v37, %v72_v38  ;;  %v317_v59 = vld [vmem:[%s1399_s4] sm:$0x3] }
  0x32   :  { %511 = vmatprep.subr.bf16.mxu1 %v970_v60  ;;  %v322_v60 = vrot.slane %v317_v59, %v68_v36 }
  0x33   :  { %261 = vmatpush1.bf16.msra.mxu0 %v927_v42 }
  0x34   :  { %262 = vmatprep.subr.bf16.mxu0 %v928_v44 }
  0x35   :  { %512 = vmatpush1.bf16.msra.mxu1 %v972_v61  ;;  %v326_v61 = vrot.slane %v317_v59, %v72_v38 }
  0x36   :  { %513 = vmatprep.subr.bf16.mxu1 %v973_v62 }
  0x37   :  { %263 = vmatpush1.bf16.msra.mxu0 %v930_v46 }
  0x38   :  { %264 = vmatprep.subr.bf16.mxu0 %v931_v48 }
  0x39   :  { %514 = vmatpush1.bf16.msra.mxu1 %v975_v63 }
  0x3a   :  { %515 = vmatprep.subr.bf16.mxu1 %v976_v0 }
  0x3b   :  { %265 = vmatpush1.bf16.msra.mxu0 %v933_v50 }
  0x3c   :  { %266 = vmatprep.subr.bf16.mxu0 %v934_v52 }
  0x3d   :  { %516 = vmatpush1.bf16.msra.mxu1 %v978_v1 }
  0x3e   :  { %517 = vmatprep.subr.bf16.mxu1 %v979_v2 }
  0x3f   :  { %267 = vmatpush1.bf16.msra.mxu0 %v936_v53 }
  0x40   :  { %742 = vmatprep.subr.bf16.mxu0 %v987_v7 }
  0x41   :  { %518 = vmatpush1.bf16.msra.mxu1 %v981_v3 }
  0x42   :  { %269 = vmatmul.mubr.bf16.vlgmr.msra.gmra.mrb[0].mxu0 %v30_v58  ;;  %519 = vmatprep.subr.bf16.mxu1 %v982_v4  ;;  %v1030_v58 = vld [vmem:[%s1397_s5 + $0xf0] ss:$8 sps:$4 sm:$0xff]  }
  0x43   :  { %743 = vmatpush1.bf16.msra.mxu0 %v985_v6 }
  0x44   :  { %744 = vmatprep.subr.bf16.mxu0 %v990_v8 }
  0x45   :  { %520 = vmatpush1.bf16.msra.mxu1 %v984_v5 }
  0x47   :  { %745 = vmatpush1.bf16.msra.mxu0 %v988_v9 }
  0x48   :  { %746 = vmatprep.subr.bf16.mxu0 %v993_v10 }
  0x4b   :  { %747 = vmatpush1.bf16.msra.mxu0 %v991_v11 }
  0x4c   :  { %748 = vmatprep.subr.bf16.mxu0 %v996_v12  ;;  %v570_v12 = vld [vmem:[%s1400_s6] sm:$0x3] }
  0x4f   :  { %749 = vmatpush1.bf16.msra.mxu0 %v994_v13  ;;  %v575_v13 = vrot.slane %v570_v12, %v68_v36 }
  0x50   :  { %750 = vmatprep.subr.bf16.mxu0 %v999_v14  ;;  %v579_v14 = vrot.slane %v570_v12, %v72_v38 }
  0x53   :  { %751 = vmatpush1.bf16.msra.mxu0 %v997_v15 }
  0x54   :  { %752 = vmatprep.subr.bf16.mxu0 %v1002_v16 }
  0x57   :  { %753 = vmatpush1.bf16.msra.mxu0 %v1000_v17 }
  0x58   :  { %754 = vmatprep.subr.bf16.mxu0 %v1005_v18 }
  0x5b   :  { %755 = vmatpush1.bf16.msra.mxu0 %v1003_v19 }
  0x5c   :  { %756 = vmatprep.subr.bf16.mxu0 %v1008_v20 }
  0x5f   :  { %757 = vmatpush1.bf16.msra.mxu0 %v1006_v21 }
  0x60   :  { %758 = vmatprep.subr.bf16.mxu0 %v1011_v22 }
  0x63   :  { %759 = vmatpush1.bf16.msra.mxu0 %v1009_v23 }
  0x64   :  { %760 = vmatprep.subr.bf16.mxu0 %v1014_v24 }
  0x67   :  { %761 = vmatpush1.bf16.msra.mxu0 %v1012_v25 }
  0x68   :  { %762 = vmatprep.subr.bf16.mxu0 %v1017_v26 }
  0x6b   :  { %763 = vmatpush1.bf16.msra.mxu0 %v1015_v27 }
  0x6c   :  { %764 = vmatprep.subr.bf16.mxu0 %v1020_v28 }
  0x6f   :  { %765 = vmatpush1.bf16.msra.mxu0 %v1018_v29 }
  0x70   :  { %766 = vmatprep.subr.bf16.mxu0 %v1023_v30 }
  0x73   :  { %767 = vmatpush1.bf16.msra.mxu0 %v1021_v31 }
  0x74   :  { %768 = vmatprep.subr.bf16.mxu0 %v1026_v32 }
  0x77   :  { %769 = vmatpush1.bf16.msra.mxu0 %v1024_v33 }
  0x78   :  { %770 = vmatprep.subr.bf16.mxu0 %v1029_v55 }
  0x7b   :  { %771 = vmatpush1.bf16.msra.mxu0 %v1027_v56 }
  0x7c   :  { %772 = vmatprep.subr.bf16.mxu0 %v1032_v57 }
  0x7f   :  { %773 = vmatpush1.bf16.msra.mxu0 %v1030_v58 }
 0x115   :  { %v270_v41 = vpop.f32.mrb[0].mxu0 }
 0x116   :  { %v271_v42 = vadd.f32 %v270_v41, %v69_v39  ;;  %v272_v43 = vpop.f32.mrb[1].mxu0 }
 0x117   :  { %v273_v44 = vadd.f32 %v272_v43, %v73_v40  ;;  %v274_v45 = vpop.f32.mrb[2].mxu0 }
 0x118   :  { %v275_v46 = vadd.f32 %v274_v45, %v69_v39  ;;  %v276_v47 = vpop.f32.mrb[3].mxu0  ;;  %v279_v49 = vmax.f32 %v271_v42, 0.0 }
 0x119   :  { %v277_v48 = vadd.f32 %v276_v47, %v73_v40  ;;  %v280_v51 = vmax.f32 %v273_v44, 0.0 }
 0x11a   :  { %v281_v50 = vmax.f32 %v275_v46, 0.0 }
 0x11b   :  { %v282_v52 = vmax.f32 %v277_v48, 0.0 }
 0x11c   :  { %v283_v53 = vpack.c.bf16 %v281_v50, %v279_v49 }
 0x11d   :  { %v284_v54 = vpack.c.bf16 %v282_v52, %v280_v51 }
 0x11f   :  { %521 = vmatprep.mubr.bf16.mxu1 %v284_v54 }
 0x120   :  { %522 = vmatmul.mubr.bf16.vlgmr.msra.gmra.mrb[0].mxu1 %v283_v53 }
 0x1f3   :  { %v523_v62 = vpop.f32.mrb[0].mxu1 }
 0x1f4   :  { %v524_v63 = vadd.f32 %v523_v62, %v322_v60  ;;  %v525_v0 = vpop.f32.mrb[1].mxu1 }
 0x1f5   :  { %v526_v1 = vadd.f32 %v525_v0, %v326_v61  ;;  %v527_v2 = vpop.f32.mrb[2].mxu1 }
 0x1f6   :  { %v528_v3 = vadd.f32 %v527_v2, %v322_v60  ;;  %v529_v4 = vpop.f32.mrb[3].mxu1  ;;  %v532_v6 = vmax.f32 %v524_v63, 0.0 }
 0x1f7   :  { %v530_v5 = vadd.f32 %v529_v4, %v326_v61  ;;  %v533_v8 = vmax.f32 %v526_v1, 0.0 }
 0x1f8   :  { %v534_v7 = vmax.f32 %v528_v3, 0.0 }
 0x1f9   :  { %v535_v9 = vmax.f32 %v530_v5, 0.0 }
 0x1fa   :  { %v536_v10 = vpack.c.bf16 %v534_v7, %v532_v6 }
 0x1fb   :  { %v537_v11 = vpack.c.bf16 %v535_v9, %v533_v8 }
 0x1fd   :  { %774 = vmatprep.mubr.bf16.mxu0 %v537_v11 }
 0x1fe   :  { %775 = vmatmul.mubr.bf16.vlgmr.msra.gmra.mrb[4].mxu0 %v536_v10 }
 0x2d1   :  { %v776_v15 = vpop.f32.mrb[4].mxu0 }
 0x2d2   :  { %v777_v16 = vadd.f32 %v776_v15, %v575_v13  ;;  %v778_v17 = vpop.f32.mrb[5].mxu0 }
 0x2d3   :  { %v779_v18 = vadd.f32 %v778_v17, %v579_v14  ;;  %v780_v19 = vpop.f32.mrb[6].mxu0 }
 0x2d4   :  { %785 = vst [vmem:[%s1401_s7] sm:$0xff] %v777_v16  ;;  %v781_v20 = vadd.f32 %v780_v19, %v575_v13  ;;  %v782_v21 = vpop.f32.mrb[7].mxu0 }
 0x2d5   :  { %786 = vst [vmem:[%s1401_s7 + $0x8] sm:$0xff] %v779_v18  ;;  %v783_v22 = vadd.f32 %v782_v21, %v579_v14 }
 0x2d6   :  { %787 = vst [vmem:[%s1401_s7 + $0x10] sm:$0xff] %v781_v20 }
 0x2d7   :  { %788 = vst [vmem:[%s1401_s7 + $0x18] sm:$0xff] %v783_v22 }

// kernel: mlp_v2_forward.1
= control target key start
LH: loop header
LB: loop body
LE: loop exit
PB: predicated region body
PF: predicated region fallthrough
CT: control target
= control target key end

     0   :  { %s1394_s1 = inlined_call_operand.vmem [shape: bf16[256,256], index: 1, kind: input, shape index: {}]   ;;  %s1395_s0 = inlined_call_operand.vmem [shape: f32[16,256], index: 0, kind: input, shape index: {}]   ;;  %s1396_s3 = inlined_call_operand.vmem [shape: bf16[256,256], index: 3, kind: input, shape index: {}]   ;;  %s1397_s5 = inlined_call_operand.vmem [shape: bf16[256,256], index: 5, kind: input, shape index: {}]   ;;  %s1398_s2 = inlined_call_operand.vmem [shape: f32[1,256], index: 2, kind: input, shape index: {}]   ;;  %s1399_s4 = inlined_call_operand.vmem [shape: f32[1,256], index: 4, kind: input, shape index: {}]   ;;  %s1400_s6 = inlined_call_operand.vmem [shape: f32[1,256], index: 6, kind: input, shape index: {}]   ;;  %s1401_s7 = inlined_call_operand.vmem [shape: f32[16,256], index: 7, kind: output, shape index: {}]  }
   0x1   :  { %v889_v0 = vld [vmem:[%s1394_s1 + $0x4] ss:$8 sps:$4 sm:$0xff]   ;;  %v891_v1 = vld [vmem:[%s1394_s1] ss:$8 sps:$4 sm:$0xff]   ;;  %v892_v2 = vld [vmem:[%s1394_s1 + $0x14] ss:$8 sps:$4 sm:$0xff]  }
   0x2   :  { %236 = vmatprep.subr.bf16.mxu0 %v889_v0  ;;  %v894_v3 = vld [vmem:[%s1394_s1 + $0x10] ss:$8 sps:$4 sm:$0xff]   ;;  %v895_v4 = vld [vmem:[%s1394_s1 + $0x24] ss:$8 sps:$4 sm:$0xff]   ;;  %v897_v5 = vld [vmem:[%s1394_s1 + $0x20] ss:$8 sps:$4 sm:$0xff]  }
   0x3   :  { %237 = vmatpush1.bf16.msra.mxu0 %v891_v1  ;;  %v898_v6 = vld [vmem:[%s1394_s1 + $0x34] ss:$8 sps:$4 sm:$0xff]   ;;  %v900_v7 = vld [vmem:[%s1394_s1 + $0x30] ss:$8 sps:$4 sm:$0xff]   ;;  %v901_v8 = vld [vmem:[%s1394_s1 + $0x44] ss:$8 sps:$4 sm:$0xff]  }
   0x4   :  { %238 = vmatprep.subr.bf16.mxu0 %v892_v2  ;;  %v903_v9 = vld [vmem:[%s1394_s1 + $0x40] ss:$8 sps:$4 sm:$0xff]   ;;  %v904_v10 = vld [vmem:[%s1394_s1 + $0x54] ss:$8 sps:$4 sm:$0xff]   ;;  %v906_v11 = vld [vmem:[%s1394_s1 + $0x50] ss:$8 sps:$4 sm:$0xff]  }
   0x5   :  { %v907_v12 = vld [vmem:[%s1394_s1 + $0x64] ss:$8 sps:$4 sm:$0xff]   ;;  %v29_v14 = vld [vmem:[%s1395_s0 + $0x18] sm:$0xff]  ;;  %v909_v15 = vld [vmem:[%s1394_s1 + $0x60] ss:$8 sps:$4 sm:$0xff]  }
   0x6   :  { %v27_v13 = vld [vmem:[%s1395_s0 + $0x8] sm:$0xff]  ;;  %v910_v16 = vld [vmem:[%s1394_s1 + $0x74] ss:$8 sps:$4 sm:$0xff]   ;;  %v942_v21 = vld [vmem:[%s1396_s3 + $0x10] ss:$8 sps:$4 sm:$0xff]  }
   0x7   :  { %239 = vmatpush1.bf16.msra.mxu0 %v894_v3  ;;  %v31_v17 = vpack.c.bf16 %v29_v14, %v27_v13  ;;  %v937_v18 = vld [vmem:[%s1396_s3 + $0x4] ss:$8 sps:$4 sm:$0xff]   ;;  %v939_v19 = vld [vmem:[%s1396_s3] ss:$8 sps:$4 sm:$0xff]   ;;  %v940_v20 = vld [vmem:[%s1396_s3 + $0x14] ss:$8 sps:$4 sm:$0xff]  }
   0x8   :  { %240 = vmatprep.subr.bf16.mxu0 %v895_v4  ;;  %489 = vmatprep.subr.bf16.mxu1 %v937_v18  ;;  %v912_v22 = vld [vmem:[%s1394_s1 + $0x70] ss:$8 sps:$4 sm:$0xff]   ;;  %v943_v23 = vld [vmem:[%s1396_s3 + $0x24] ss:$8 sps:$4 sm:$0xff]   ;;  %v945_v25 = vld [vmem:[%s1396_s3 + $0x20] ss:$8 sps:$4 sm:$0xff]  }
   0x9   :  { %268 = vmatprep.mubr.bf16.mxu0 %v31_v17  ;;  %490 = vmatpush1.bf16.msra.mxu1 %v939_v19  ;;  %v913_v24 = vld [vmem:[%s1394_s1 + $0x84] ss:$8 sps:$4 sm:$0xff]   ;;  %v915_v26 = vld [vmem:[%s1394_s1 + $0x80] ss:$8 sps:$4 sm:$0xff]   ;;  %v946_v27 = vld [vmem:[%s1396_s3 + $0x34] ss:$8 sps:$4 sm:$0xff]  }
   0xa   :  { %491 = vmatprep.subr.bf16.mxu1 %v940_v20  ;;  %v916_v28 = vld [vmem:[%s1394_s1 + $0x94] ss:$8 sps:$4 sm:$0xff]   ;;  %v948_v29 = vld [vmem:[%s1396_s3 + $0x30] ss:$8 sps:$4 sm:$0xff]   ;;  %v949_v31 = vld [vmem:[%s1396_s3 + $0x44] ss:$8 sps:$4 sm:$0xff]  }
   0xb   :  { %241 = vmatpush1.bf16.msra.mxu0 %v897_v5  ;;  %v918_v30 = vld [vmem:[%s1394_s1 + $0x90] ss:$8 sps:$4 sm:$0xff]   ;;  %v919_v32 = vld [vmem:[%s1394_s1 + $0xa4] ss:$8 sps:$4 sm:$0xff]   ;;  %v951_v33 = vld [vmem:[%s1396_s3 + $0x40] ss:$8 sps:$4 sm:$0xff]  }
   0xc   :  { %242 = vmatprep.subr.bf16.mxu0 %v898_v6  ;;  %v921_v34 = vld [vmem:[%s1394_s1 + $0xa0] ss:$8 sps:$4 sm:$0xff]   ;;  %v952_v35 = vld [vmem:[%s1396_s3 + $0x54] ss:$8 sps:$4 sm:$0xff]   ;;  %v954_v37 = vld [vmem:[%s1396_s3 + $0x50] ss:$8 sps:$4 sm:$0xff]  }
   0xd   :  { %492 = vmatpush1.bf16.msra.mxu1 %v942_v21  ;;  %v922_v36 = vld [vmem:[%s1394_s1 + $0xb4] ss:$8 sps:$4 sm:$0xff]   ;;  %v924_v38 = vld [vmem:[%s1394_s1 + $0xb0] ss:$8 sps:$4 sm:$0xff]   ;;  %v955_v39 = vld [vmem:[%s1396_s3 + $0x64] ss:$8 sps:$4 sm:$0xff]  }
   0xe   :  { %493 = vmatprep.subr.bf16.mxu1 %v943_v23  ;;  %v925_v40 = vld [vmem:[%s1394_s1 + $0xc4] ss:$8 sps:$4 sm:$0xff]   ;;  %v957_v41 = vld [vmem:[%s1396_s3 + $0x60] ss:$8 sps:$4 sm:$0xff]   ;;  %v958_v43 = vld [vmem:[%s1396_s3 + $0x74] ss:$8 sps:$4 sm:$0xff]  }
   0xf   :  { %243 = vmatpush1.bf16.msra.mxu0 %v900_v7  ;;  %v927_v42 = vld [vmem:[%s1394_s1 + $0xc0] ss:$8 sps:$4 sm:$0xff]   ;;  %v928_v44 = vld [vmem:[%s1394_s1 + $0xd4] ss:$8 sps:$4 sm:$0xff]   ;;  %v960_v45 = vld [vmem:[%s1396_s3 + $0x70] ss:$8 sps:$4 sm:$0xff]  }
  0x10   :  { %244 = vmatprep.subr.bf16.mxu0 %v901_v8  ;;  %v930_v46 = vld [vmem:[%s1394_s1 + $0xd0] ss:$8 sps:$4 sm:$0xff]   ;;  %v961_v47 = vld [vmem:[%s1396_s3 + $0x84] ss:$8 sps:$4 sm:$0xff]   ;;  %v963_v49 = vld [vmem:[%s1396_s3 + $0x80] ss:$8 sps:$4 sm:$0xff]  }
  0x11   :  { %494 = vmatpush1.bf16.msra.mxu1 %v945_v25  ;;  %v931_v48 = vld [vmem:[%s1394_s1 + $0xe4] ss:$8 sps:$4 sm:$0xff]   ;;  %v933_v50 = vld [vmem:[%s1394_s1 + $0xe0] ss:$8 sps:$4 sm:$0xff]   ;;  %v964_v51 = vld [vmem:[%s1396_s3 + $0x94] ss:$8 sps:$4 sm:$0xff]  }
  0x12   :  { %495 = vmatprep.subr.bf16.mxu1 %v946_v27  ;;  %v934_v52 = vld [vmem:[%s1394_s1 + $0xf4] ss:$8 sps:$4 sm:$0xff]   ;;  %v936_v53 = vld [vmem:[%s1394_s1 + $0xf0] ss:$8 sps:$4 sm:$0xff]   ;;  %v26_v55 = vld [vmem:[%s1395_s0] sm:$0xff] }
  0x13   :  { %245 = vmatpush1.bf16.msra.mxu0 %v903_v9  ;;  %v966_v54 = vld [vmem:[%s1396_s3 + $0x90] ss:$8 sps:$4 sm:$0xff]   ;;  %v967_v57 = vld [vmem:[%s1396_s3 + $0xa4] ss:$8 sps:$4 sm:$0xff]   ;;  %v969_v59 = vld [vmem:[%s1396_s3 + $0xa0] ss:$8 sps:$4 sm:$0xff]  }
  0x14   :  { %246 = vmatprep.subr.bf16.mxu0 %v904_v10  ;;  %v28_v56 = vld [vmem:[%s1395_s0 + $0x10] sm:$0xff]  ;;  %v973_v62 = vld [vmem:[%s1396_s3 + $0xc4] ss:$8 sps:$4 sm:$0xff]   ;;  %v975_v63 = vld [vmem:[%s1396_s3 + $0xc0] ss:$8 sps:$4 sm:$0xff]  }
  0x15   :  { %496 = vmatpush1.bf16.msra.mxu1 %v948_v29  ;;  %v30_v58 = vpack.c.bf16 %v28_v56, %v26_v55  ;;  %v970_v60 = vld [vmem:[%s1396_s3 + $0xb4] ss:$8 sps:$4 sm:$0xff]   ;;  %v972_v61 = vld [vmem:[%s1396_s3 + $0xb0] ss:$8 sps:$4 sm:$0xff]   ;;  %v979_v2 = vld [vmem:[%s1396_s3 + $0xe4] ss:$8 sps:$4 sm:$0xff]  }
  0x16   :  { %497 = vmatprep.subr.bf16.mxu1 %v949_v31  ;;  %v976_v0 = vld [vmem:[%s1396_s3 + $0xd4] ss:$8 sps:$4 sm:$0xff]   ;;  %v978_v1 = vld [vmem:[%s1396_s3 + $0xd0] ss:$8 sps:$4 sm:$0xff]   ;;  %v981_v3 = vld [vmem:[%s1396_s3 + $0xe0] ss:$8 sps:$4 sm:$0xff]  }
  0x17   :  { %247 = vmatpush1.bf16.msra.mxu0 %v906_v11  ;;  %v982_v4 = vld [vmem:[%s1396_s3 + $0xf4] ss:$8 sps:$4 sm:$0xff]   ;;  %v984_v5 = vld [vmem:[%s1396_s3 + $0xf0] ss:$8 sps:$4 sm:$0xff]   ;;  %v985_v6 = vld [vmem:[%s1397_s5] ss:$8 sps:$4 sm:$0xff]  }
  0x18   :  { %248 = vmatprep.subr.bf16.mxu0 %v907_v12  ;;  %v987_v7 = vld [vmem:[%s1397_s5 + $0x4] ss:$8 sps:$4 sm:$0xff]   ;;  %v990_v8 = vld [vmem:[%s1397_s5 + $0x14] ss:$8 sps:$4 sm:$0xff]   ;;  %v988_v9 = vld [vmem:[%s1397_s5 + $0x10] ss:$8 sps:$4 sm:$0xff]  }
  0x19   :  { %498 = vmatpush1.bf16.msra.mxu1 %v951_v33  ;;  %v993_v10 = vld [vmem:[%s1397_s5 + $0x24] ss:$8 sps:$4 sm:$0xff]   ;;  %v991_v11 = vld [vmem:[%s1397_s5 + $0x20] ss:$8 sps:$4 sm:$0xff]   ;;  %v996_v12 = vld [vmem:[%s1397_s5 + $0x34] ss:$8 sps:$4 sm:$0xff]  }
  0x1a   :  { %499 = vmatprep.subr.bf16.mxu1 %v952_v35  ;;  %v994_v13 = vld [vmem:[%s1397_s5 + $0x30] ss:$8 sps:$4 sm:$0xff]   ;;  %v999_v14 = vld [vmem:[%s1397_s5 + $0x44] ss:$8 sps:$4 sm:$0xff]   ;;  %v1003_v19 = vld [vmem:[%s1397_s5 + $0x60] ss:$8 sps:$4 sm:$0xff]  }
  0x1b   :  { %249 = vmatpush1.bf16.msra.mxu0 %v909_v15  ;;  %v997_v15 = vld [vmem:[%s1397_s5 + $0x40] ss:$8 sps:$4 sm:$0xff]   ;;  %v1000_v17 = vld [vmem:[%s1397_s5 + $0x50] ss:$8 sps:$4 sm:$0xff]   ;;  %v1005_v18 = vld [vmem:[%s1397_s5 + $0x64] ss:$8 sps:$4 sm:$0xff]  }
  0x1c   :  { %250 = vmatprep.subr.bf16.mxu0 %v910_v16  ;;  %v1002_v16 = vld [vmem:[%s1397_s5 + $0x54] ss:$8 sps:$4 sm:$0xff]   ;;  %v1006_v21 = vld [vmem:[%s1397_s5 + $0x70] ss:$8 sps:$4 sm:$0xff]   ;;  %v1009_v23 = vld [vmem:[%s1397_s5 + $0x80] ss:$8 sps:$4 sm:$0xff]  }
  0x1d   :  { %500 = vmatpush1.bf16.msra.mxu1 %v954_v37  ;;  %v1008_v20 = vld [vmem:[%s1397_s5 + $0x74] ss:$8 sps:$4 sm:$0xff]   ;;  %v1012_v25 = vld [vmem:[%s1397_s5 + $0x90] ss:$8 sps:$4 sm:$0xff]   ;;  %v1015_v27 = vld [vmem:[%s1397_s5 + $0xa0] ss:$8 sps:$4 sm:$0xff]  }
  0x1e   :  { %501 = vmatprep.subr.bf16.mxu1 %v955_v39  ;;  %v1018_v29 = vld [vmem:[%s1397_s5 + $0xb0] ss:$8 sps:$4 sm:$0xff]   ;;  %v1021_v31 = vld [vmem:[%s1397_s5 + $0xc0] ss:$8 sps:$4 sm:$0xff]   ;;  %v1029_v55 = vld [vmem:[%s1397_s5 + $0xe4] ss:$8 sps:$4 sm:$0xff]  }
  0x1f   :  { %251 = vmatpush1.bf16.msra.mxu0 %v912_v22  ;;  %v1011_v22 = vld [vmem:[%s1397_s5 + $0x84] ss:$8 sps:$4 sm:$0xff]   ;;  %v1024_v33 = vld [vmem:[%s1397_s5 + $0xd0] ss:$8 sps:$4 sm:$0xff]   ;;  %v64_v37 = vld [vmem:[%s1398_s2] sm:$0x3] }
  0x20   :  { %252 = vmatprep.subr.bf16.mxu0 %v913_v24  ;;  %v1014_v24 = vld [vmem:[%s1397_s5 + $0x94] ss:$8 sps:$4 sm:$0xff]   ;;  %v1027_v56 = vld [vmem:[%s1397_s5 + $0xe0] ss:$8 sps:$4 sm:$0xff]  }
  0x21   :  { %502 = vmatpush1.bf16.msra.mxu1 %v957_v41 }
  0x22   :  { %503 = vmatprep.subr.bf16.mxu1 %v958_v43 }
  0x23   :  { %253 = vmatpush1.bf16.msra.mxu0 %v915_v26  ;;  %v1017_v26 = vld [vmem:[%s1397_s5 + $0xa4] ss:$8 sps:$4 sm:$0xff]  }
  0x24   :  { %254 = vmatprep.subr.bf16.mxu0 %v916_v28  ;;  %v1020_v28 = vld [vmem:[%s1397_s5 + $0xb4] ss:$8 sps:$4 sm:$0xff]  }
  0x25   :  { %504 = vmatpush1.bf16.msra.mxu1 %v960_v45 }
  0x26   :  { %505 = vmatprep.subr.bf16.mxu1 %v961_v47 }
  0x27   :  { %255 = vmatpush1.bf16.msra.mxu0 %v918_v30  ;;  %v1023_v30 = vld [vmem:[%s1397_s5 + $0xc4] ss:$8 sps:$4 sm:$0xff]  }
  0x28   :  { %256 = vmatprep.subr.bf16.mxu0 %v919_v32  ;;  %v1026_v32 = vld [vmem:[%s1397_s5 + $0xd4] ss:$8 sps:$4 sm:$0xff]  }
  0x29   :  { %506 = vmatpush1.bf16.msra.mxu1 %v963_v49 }
  0x2a   :  { %507 = vmatprep.subr.bf16.mxu1 %v964_v51 }
  0x2b   :  { %257 = vmatpush1.bf16.msra.mxu0 %v921_v34  ;;  %v66_v34 = vlaneseq }
  0x2c   :  { %258 = vmatprep.subr.bf16.mxu0 %v922_v36 }
  0x2d   :  { %508 = vmatpush1.bf16.msra.mxu1 %v966_v54  ;;  %v67_v35 = vshrl.u32 %v66_v34, 7 }
  0x2e   :  { %509 = vmatprep.subr.bf16.mxu1 %v967_v57  ;;  %v1032_v57 = vld [vmem:[%s1397_s5 + $0xf4] ss:$8 sps:$4 sm:$0xff]  }
  0x2f   :  { %259 = vmatpush1.bf16.msra.mxu0 %v924_v38  ;;  %v68_v36 = vsub.s32 0, %v67_v35  ;;  %v72_v38 = vsub.s32 1, %v67_v35 }
  0x30   :  { %260 = vmatprep.subr.bf16.mxu0 %v925_v40 }
  0x31   :  { %510 = vmatpush1.bf16.msra.mxu1 %v969_v59  ;;  %v69_v39 = vrot.slane %v64_v37, %v68_v36  ;;  %v73_v40 = vrot.slane %v64_v37, %v72_v38  ;;  %v317_v59 = vld [vmem:[%s1399_s4] sm:$0x3] }
  0x32   :  { %511 = vmatprep.subr.bf16.mxu1 %v970_v60  ;;  %v322_v60 = vrot.slane %v317_v59, %v68_v36 }
  0x33   :  { %261 = vmatpush1.bf16.msra.mxu0 %v927_v42 }
  0x34   :  { %262 = vmatprep.subr.bf16.mxu0 %v928_v44 }
  0x35   :  { %512 = vmatpush1.bf16.msra.mxu1 %v972_v61  ;;  %v326_v61 = vrot.slane %v317_v59, %v72_v38 }
  0x36   :  { %513 = vmatprep.subr.bf16.mxu1 %v973_v62 }
  0x37   :  { %263 = vmatpush1.bf16.msra.mxu0 %v930_v46 }
  0x38   :  { %264 = vmatprep.subr.bf16.mxu0 %v931_v48 }
  0x39   :  { %514 = vmatpush1.bf16.msra.mxu1 %v975_v63 }
  0x3a   :  { %515 = vmatprep.subr.bf16.mxu1 %v976_v0 }
  0x3b   :  { %265 = vmatpush1.bf16.msra.mxu0 %v933_v50 }
  0x3c   :  { %266 = vmatprep.subr.bf16.mxu0 %v934_v52 }
  0x3d   :  { %516 = vmatpush1.bf16.msra.mxu1 %v978_v1 }
  0x3e   :  { %517 = vmatprep.subr.bf16.mxu1 %v979_v2 }
  0x3f   :  { %267 = vmatpush1.bf16.msra.mxu0 %v936_v53 }
  0x40   :  { %742 = vmatprep.subr.bf16.mxu0 %v987_v7 }
  0x41   :  { %518 = vmatpush1.bf16.msra.mxu1 %v981_v3 }
  0x42   :  { %269 = vmatmul.mubr.bf16.vlgmr.msra.gmra.mrb[0].mxu0 %v30_v58  ;;  %519 = vmatprep.subr.bf16.mxu1 %v982_v4  ;;  %v1030_v58 = vld [vmem:[%s1397_s5 + $0xf0] ss:$8 sps:$4 sm:$0xff]  }
  0x43   :  { %743 = vmatpush1.bf16.msra.mxu0 %v985_v6 }
  0x44   :  { %744 = vmatprep.subr.bf16.mxu0 %v990_v8 }
  0x45   :  { %520 = vmatpush1.bf16.msra.mxu1 %v984_v5 }
  0x47   :  { %745 = vmatpush1.bf16.msra.mxu0 %v988_v9 }
  0x48   :  { %746 = vmatprep.subr.bf16.mxu0 %v993_v10 }
  0x4b   :  { %747 = vmatpush1.bf16.msra.mxu0 %v991_v11 }
  0x4c   :  { %748 = vmatprep.subr.bf16.mxu0 %v996_v12  ;;  %v570_v12 = vld [vmem:[%s1400_s6] sm:$0x3] }
  0x4f   :  { %749 = vmatpush1.bf16.msra.mxu0 %v994_v13  ;;  %v575_v13 = vrot.slane %v570_v12, %v68_v36 }
  0x50   :  { %750 = vmatprep.subr.bf16.mxu0 %v999_v14  ;;  %v579_v14 = vrot.slane %v570_v12, %v72_v38 }
  0x53   :  { %751 = vmatpush1.bf16.msra.mxu0 %v997_v15 }
  0x54   :  { %752 = vmatprep.subr.bf16.mxu0 %v1002_v16 }
  0x57   :  { %753 = vmatpush1.bf16.msra.mxu0 %v1000_v17 }
  0x58   :  { %754 = vmatprep.subr.bf16.mxu0 %v1005_v18 }
  0x5b   :  { %755 = vmatpush1.bf16.msra.mxu0 %v1003_v19 }
  0x5c   :  { %756 = vmatprep.subr.bf16.mxu0 %v1008_v20 }
  0x5f   :  { %757 = vmatpush1.bf16.msra.mxu0 %v1006_v21 }
  0x60   :  { %758 = vmatprep.subr.bf16.mxu0 %v1011_v22 }
  0x63   :  { %759 = vmatpush1.bf16.msra.mxu0 %v1009_v23 }
  0x64   :  { %760 = vmatprep.subr.bf16.mxu0 %v1014_v24 }
  0x67   :  { %761 = vmatpush1.bf16.msra.mxu0 %v1012_v25 }
  0x68   :  { %762 = vmatprep.subr.bf16.mxu0 %v1017_v26 }
  0x6b   :  { %763 = vmatpush1.bf16.msra.mxu0 %v1015_v27 }
  0x6c   :  { %764 = vmatprep.subr.bf16.mxu0 %v1020_v28 }
  0x6f   :  { %765 = vmatpush1.bf16.msra.mxu0 %v1018_v29 }
  0x70   :  { %766 = vmatprep.subr.bf16.mxu0 %v1023_v30 }
  0x73   :  { %767 = vmatpush1.bf16.msra.mxu0 %v1021_v31 }
  0x74   :  { %768 = vmatprep.subr.bf16.mxu0 %v1026_v32 }
  0x77   :  { %769 = vmatpush1.bf16.msra.mxu0 %v1024_v33 }
  0x78   :  { %770 = vmatprep.subr.bf16.mxu0 %v1029_v55 }
  0x7b   :  { %771 = vmatpush1.bf16.msra.mxu0 %v1027_v56 }
  0x7c   :  { %772 = vmatprep.subr.bf16.mxu0 %v1032_v57 }
  0x7f   :  { %773 = vmatpush1.bf16.msra.mxu0 %v1030_v58 }
 0x115   :  { %v270_v41 = vpop.f32.mrb[0].mxu0 }
 0x116   :  { %v271_v42 = vadd.f32 %v270_v41, %v69_v39  ;;  %v272_v43 = vpop.f32.mrb[1].mxu0 }
 0x117   :  { %v273_v44 = vadd.f32 %v272_v43, %v73_v40  ;;  %v274_v45 = vpop.f32.mrb[2].mxu0 }
 0x118   :  { %v275_v46 = vadd.f32 %v274_v45, %v69_v39  ;;  %v276_v47 = vpop.f32.mrb[3].mxu0  ;;  %v279_v49 = vmax.f32 %v271_v42, 0.0 }
 0x119   :  { %v277_v48 = vadd.f32 %v276_v47, %v73_v40  ;;  %v280_v51 = vmax.f32 %v273_v44, 0.0 }
 0x11a   :  { %v281_v50 = vmax.f32 %v275_v46, 0.0 }
 0x11b   :  { %v282_v52 = vmax.f32 %v277_v48, 0.0 }
 0x11c   :  { %v283_v53 = vpack.c.bf16 %v281_v50, %v279_v49 }
 0x11d   :  { %v284_v54 = vpack.c.bf16 %v282_v52, %v280_v51 }
 0x11f   :  { %521 = vmatprep.mubr.bf16.mxu1 %v284_v54 }
 0x120   :  { %522 = vmatmul.mubr.bf16.vlgmr.msra.gmra.mrb[0].mxu1 %v283_v53 }
 0x1f3   :  { %v523_v62 = vpop.f32.mrb[0].mxu1 }
 0x1f4   :  { %v524_v63 = vadd.f32 %v523_v62, %v322_v60  ;;  %v525_v0 = vpop.f32.mrb[1].mxu1 }
 0x1f5   :  { %v526_v1 = vadd.f32 %v525_v0, %v326_v61  ;;  %v527_v2 = vpop.f32.mrb[2].mxu1 }
 0x1f6   :  { %v528_v3 = vadd.f32 %v527_v2, %v322_v60  ;;  %v529_v4 = vpop.f32.mrb[3].mxu1  ;;  %v532_v6 = vmax.f32 %v524_v63, 0.0 }
 0x1f7   :  { %v530_v5 = vadd.f32 %v529_v4, %v326_v61  ;;  %v533_v8 = vmax.f32 %v526_v1, 0.0 }
 0x1f8   :  { %v534_v7 = vmax.f32 %v528_v3, 0.0 }
 0x1f9   :  { %v535_v9 = vmax.f32 %v530_v5, 0.0 }
 0x1fa   :  { %v536_v10 = vpack.c.bf16 %v534_v7, %v532_v6 }
 0x1fb   :  { %v537_v11 = vpack.c.bf16 %v535_v9, %v533_v8 }
 0x1fd   :  { %774 = vmatprep.mubr.bf16.mxu0 %v537_v11 }
 0x1fe   :  { %775 = vmatmul.mubr.bf16.vlgmr.msra.gmra.mrb[4].mxu0 %v536_v10 }
 0x2d1   :  { %v776_v15 = vpop.f32.mrb[4].mxu0 }
 0x2d2   :  { %v777_v16 = vadd.f32 %v776_v15, %v575_v13  ;;  %v778_v17 = vpop.f32.mrb[5].mxu0 }
 0x2d3   :  { %v779_v18 = vadd.f32 %v778_v17, %v579_v14  ;;  %v780_v19 = vpop.f32.mrb[6].mxu0 }
 0x2d4   :  { %785 = vst [vmem:[%s1401_s7] sm:$0xff] %v777_v16  ;;  %v781_v20 = vadd.f32 %v780_v19, %v575_v13  ;;  %v782_v21 = vpop.f32.mrb[7].mxu0 }
 0x2d5   :  { %786 = vst [vmem:[%s1401_s7 + $0x8] sm:$0xff] %v779_v18  ;;  %v783_v22 = vadd.f32 %v782_v21, %v579_v14 }
 0x2d6   :  { %787 = vst [vmem:[%s1401_s7 + $0x10] sm:$0xff] %v781_v20 }
 0x2d7   :  { %788 = vst [vmem:[%s1401_s7 + $0x18] sm:$0xff] %v783_v22 }

</bundles_post_ra>
